<compile_context>
chip_gen: v7x
topology: tpu7x:2x2x1
jax: 0.10.0
libtpu: 0.0.40
codegen_flags: <defaults>
</compile_context>

<pallas_src>
import math
from functools import partial

import jax
import jax.numpy as jnp
from jax import lax
from jax.experimental import pallas as pl
from jax.experimental.pallas import tpu as pltpu


def _round_up(x, m):
    return ((x + m - 1) // m) * m


# ----------------------------------------------------------------------------
# Kernels
# ----------------------------------------------------------------------------
def _resident_kernel(p_ref, w_ref, b_ref, o_ref):
    """W fully VMEM-resident: out = ReLU(patches) @ W + b in one shot."""
    x = jnp.maximum(p_ref[...], 0)                       # ReLU on the VPU (bf16)
    acc = jnp.dot(x, w_ref[...], preferred_element_type=jnp.float32)
    o_ref[...] = (acc + b_ref[...]).astype(o_ref.dtype)  # folded-BN bias + cast


def _tiled_kernel(p_ref, w_ref, b_ref, o_ref, acc_ref):
    """K/N-tiled fallback with persistent f32 accumulator (reduction last)."""
    k = pl.program_id(2)

    @pl.when(k == 0)
    def _():
        acc_ref[...] = jnp.zeros_like(acc_ref)

    x = jnp.maximum(p_ref[...], 0)
    acc_ref[...] += jnp.dot(x, w_ref[...], preferred_element_type=jnp.float32)

    @pl.when(k == pl.num_programs(2) - 1)
    def _():
        o_ref[...] = (acc_ref[...] + b_ref[...]).astype(o_ref.dtype)


# ----------------------------------------------------------------------------
# pallas_call wrappers
# ----------------------------------------------------------------------------
_VMEM_LIMIT = 32 * 1024 * 1024          # explicit: > v5e 16 MiB default, < v7x 64 MiB
_VMEM_BUDGET = 24 * 1024 * 1024         # working-set budget for tile sizing
_RESIDENT_W_BYTES = 6 * 1024 * 1024     # use resident path if bf16 W <= this


def _vmem_estimate_resident(tm, K, Np, out_itemsize):
    return (2 * tm * K * 2          # double-buffered bf16 patches tile
            + 2 * K * Np * 2        # resident bf16 W (count 2 buffers, safe)
            + 2 * tm * Np * out_itemsize  # double-buffered output tile
            + 2 * Np * 4)           # bias


def _resident_path(p, w, b, out_dtype):
    M, K = p.shape
    _, N = w.shape

    Np = _round_up(N, 128)
    if Np > 256:
        Np = _round_up(N, 256)      # prefer 256-multiples (v6e/v7x MXU width)

    if M >= 1024:
        tm = 1024
    elif M >= 512:
        tm = 512
    elif M >= 256:
        tm = 256
    else:
        tm = _round_up(M, 8)

    out_itemsize = jnp.dtype(out_dtype).itemsize
    while tm > 256 and _vmem_estimate_resident(tm, K, Np, out_itemsize) > _VMEM_BUDGET:
        tm //= 2
    Mp = _round_up(M, tm)

    if Mp != M:
        p = jnp.pad(p, ((0, Mp - M), (0, 0)))
    if Np != N:
        w = jnp.pad(w, ((0, 0), (0, Np - N)))
        b = jnp.pad(b, ((0, 0), (0, Np - N)))

    grid = (Mp // tm,)
    cost = pl.CostEstimate(
        flops=2 * Mp * K * Np,
        transcendentals=0,
        bytes_accessed=int(Mp * K * 2 + K * Np * 2 + Mp * Np * out_itemsize),
    )

    out = pl.pallas_call(
        _resident_kernel,
        out_shape=jax.ShapeDtypeStruct((Mp, Np), out_dtype),
        grid_spec=pltpu.PrefetchScalarGridSpec(
            num_scalar_prefetch=0,
            grid=grid,
            in_specs=[
                pl.BlockSpec((tm, K), lambda i: (i, 0)),    # patches (streams once)
                pl.BlockSpec((K, Np), lambda i: (0, 0)),    # folded W (resident)
                pl.BlockSpec((1, Np), lambda i: (0, 0)),    # folded bias
            ],
            out_specs=pl.BlockSpec((tm, Np), lambda i: (i, 0)),
        ),
        compiler_params=pltpu.CompilerParams(
            dimension_semantics=("parallel",),              # M split across TCs (v7x)
            vmem_limit_bytes=_VMEM_LIMIT,
        ),
        cost_estimate=cost,
    )(p, w, b)

    if (Mp, Np) != (M, N):
        out = out[:M, :N]
    return out


def _tiled_path(p, w, b, out_dtype):
    M, K = p.shape
    _, N = w.shape

    tm = 512 if M >= 512 else (256 if M >= 256 else _round_up(M, 8))
    tk = 256 if K > 128 else 128     # 256-multiple tiles preferred on v6e/v7x
    tn = 256 if N > 128 else 128     # pad N up to the tile, never shrink it
    Mp, Kp, Np = _round_up(M, tm), _round_up(K, tk), _round_up(N, tn)

    if (Mp, Kp) != (M, K):
        p = jnp.pad(p, ((0, Mp - M), (0, Kp - K)))
    if (Kp, Np) != (K, N):
        w = jnp.pad(w, ((0, Kp - K), (0, Np - N)))
    if Np != N:
        b = jnp.pad(b, ((0, 0), (0, Np - N)))

    grid = (Mp // tm, Np // tn, Kp // tk)
    out_itemsize = jnp.dtype(out_dtype).itemsize
    cost = pl.CostEstimate(
        flops=2 * Mp * Kp * Np,
        transcendentals=0,
        bytes_accessed=int((Np // tn) * Mp * Kp * 2 + (Mp // tm) * Kp * Np * 2
                           + Mp * Np * out_itemsize),
    )

    out = pl.pallas_call(
        _tiled_kernel,
        out_shape=jax.ShapeDtypeStruct((Mp, Np), out_dtype),
        grid_spec=pltpu.PrefetchScalarGridSpec(
            num_scalar_prefetch=0,
            grid=grid,
            in_specs=[
                pl.BlockSpec((tm, tk), lambda i, j, k: (i, k)),   # patches
                pl.BlockSpec((tk, tn), lambda i, j, k: (k, j)),   # folded W
                pl.BlockSpec((1, tn), lambda i, j, k: (0, j)),    # folded bias
            ],
            out_specs=pl.BlockSpec((tm, tn), lambda i, j, k: (i, j)),
            scratch_shapes=[pltpu.VMEM((tm, tn), jnp.float32)],
        ),
        compiler_params=pltpu.CompilerParams(
            dimension_semantics=("parallel", "parallel", "arbitrary"),
            vmem_limit_bytes=_VMEM_LIMIT,
        ),
        cost_estimate=cost,
    )(p, w, b)

    if (Mp, Np) != (M, N):
        out = out[:M, :N]
    return out


def _fused_relu_matmul_bias(patches, w_folded, b_folded, out_dtype,
                            force_tiled=False):
    """patches: (M, K); w_folded: (K, N); b_folded: (N,)."""
    M, K = patches.shape
    K2, N = w_folded.shape
    assert K == K2

    p = patches.astype(jnp.bfloat16)            # bf16 MXU inputs, f32 accumulate
    w = w_folded.astype(jnp.bfloat16)
    b = b_folded.astype(jnp.float32).reshape(1, N)

    w_bytes = K * _round_up(N, 128) * 2
    if (not force_tiled) and w_bytes <= _RESIDENT_W_BYTES:
        return _resident_path(p, w, b, out_dtype)
    return _tiled_path(p, w, b, out_dtype)


# ----------------------------------------------------------------------------
# Host-side layout plumbing (pure glue, fused under jit)
# ----------------------------------------------------------------------------
def _im2col_nhwc(x_nhwc, kernel_size, stride, padding):
    """Return ((N*Ho*Wo, k*k*C) patches, (Ho, Wo)). Feature order matches a
    weight reshaped from (kh, kw, C_in, C_out)."""
    N, H, W, C = x_nhwc.shape
    if padding:
        x_nhwc = jnp.pad(
            x_nhwc, ((0, 0), (padding, padding), (padding, padding), (0, 0)))
    Hp, Wp = H + 2 * padding, W + 2 * padding
    Ho = (Hp - kernel_size) // stride + 1
    Wo = (Wp - kernel_size) // stride + 1

    cols = []
    for dh in range(kernel_size):
        for dw in range(kernel_size):
            sl = x_nhwc[:, dh: dh + stride * (Ho - 1) + 1: stride,
                           dw: dw + stride * (Wo - 1) + 1: stride, :]
            cols.append(sl)
    patches = jnp.concatenate(cols, axis=-1) if len(cols) > 1 else cols[0]
    return patches.reshape(N * Ho * Wo, kernel_size * kernel_size * C), (Ho, Wo)


@partial(jax.jit,
         static_argnames=("kernel_size", "stride", "padding", "force_tiled"))
def _relu_conv_bn_fwd(x, w_folded, shift, *, kernel_size, stride, padding,
                      force_tiled):
    N = x.shape[0]
    out_dtype = x.dtype
    # NCHW -> NHWC in bf16 (half the layout-pass bytes), im2col, fused kernel.
    x_nhwc = jnp.transpose(x, (0, 2, 3, 1)).astype(jnp.bfloat16)
    patches, (Ho, Wo) = _im2col_nhwc(x_nhwc, kernel_size, stride, padding)
    out2d = _fused_relu_matmul_bias(patches, w_folded, shift, out_dtype,
                                    force_tiled=force_tiled)
    out = out2d.reshape(N, Ho, Wo, -1)
    # TODO(synk): keep NHWC end-to-end if the surrounding model allows it; the
    # final transpose is an extra HBM pass kept here only to match NCHW I/O.
    return jnp.transpose(out, (0, 3, 1, 2))


# ----------------------------------------------------------------------------
# Module mirror
# ----------------------------------------------------------------------------
class ReLUConvBNPallas:
    """JAX/Pallas mirror of piconas ReLUConvBN (ReLU -> Conv2d -> BatchNorm2d)."""

    def __init__(self, C_in, C_out, kernel_size, stride=1, affine=False,
                 bias=False, track_running_stats=True, **kwargs):
        params = dict(locals())
        self.init_params = {
            k: v for k, v in params.items()
            if k != "self" and (not k.startswith("_")) and (k != "kwargs")
        }

        self.C_in, self.C_out = C_in, C_out
        self.kernel_size = kernel_size
        self.stride = stride
        self.padding = 0 if kernel_size == 1 else 1
        self.affine = affine
        self.track_running_stats = track_running_stats
        self.eps = 1e-5
        self._force_tiled = False   # test hook: force the K/N-tiled kernel path

        # Parameters / buffers (PyTorch-like init; overridable from outside).
        fan_in = C_in * kernel_size * kernel_size
        bound = 1.0 / math.sqrt(fan_in)
        wkey = kwargs.get("_param_key", jax.random.PRNGKey(0))
        self.weight = jax.random.uniform(
            wkey, (C_out, C_in, kernel_size, kernel_size), jnp.float32,
            -bound, bound)
        self.conv_bias = jnp.zeros((C_out,), jnp.float32) if bias else None
        self.gamma = jnp.ones((C_out,), jnp.float32) if affine else None
        self.beta = jnp.zeros((C_out,), jnp.float32) if affine else None
        self.running_mean = jnp.zeros((C_out,), jnp.float32)
        self.running_var = jnp.ones((C_out,), jnp.float32)

    def forward(self, x, edge_data=None):
        # x: NCHW.  edge_data is metadata only (unused by the tensor math).
        N, C, H, W = x.shape
        assert C == self.C_in
        ks, st, pd = self.kernel_size, self.stride, self.padding

        # --- Fold BN (running stats) into the conv weights / bias (host) ---
        scale = 1.0 / jnp.sqrt(self.running_var + self.eps)
        if self.gamma is not None:
            scale = scale * self.gamma
        shift = -self.running_mean * scale
        if self.beta is not None:
            shift = shift + self.beta
        if self.conv_bias is not None:
            shift = shift + self.conv_bias * scale

        # OIHW -> (kh, kw, C_in, C_out) -> (kh*kw*C_in, C_out), scale folded.
        w = jnp.transpose(self.weight, (2, 3, 1, 0)).reshape(
            ks * ks * self.C_in, self.C_out)
        w_folded = (w * scale[None, :]).astype(jnp.float32)

        return _relu_conv_bn_fwd(
            x, w_folded, shift.astype(jnp.float32),
            kernel_size=ks, stride=st, padding=pd,
            force_tiled=self._force_tiled)

    forward_beforeGP = forward

    def get_embedded_ops(self):
        return None

    @property
    def get_op_name(self):
        return type(self).__name__ + "{}x{}".format(self.kernel_size,
                                                     self.kernel_size)


# ----------------------------------------------------------------------------
# Pure-JAX reference (ReLU -> conv -> inference BN) for correctness checking
# ----------------------------------------------------------------------------
def _reference(x, op):
    xr = jnp.maximum(x, 0.0)
    y = lax.conv_general_dilated(
        xr, op.weight, window_strides=(op.stride, op.stride),
        padding=[(op.padding, op.padding)] * 2,
        dimension_numbers=("NCHW", "OIHW", "NCHW"))
    if op.conv_bias is not None:
        y = y + op.conv_bias[None, :, None, None]
    scale = 1.0 / jnp.sqrt(op.running_var + op.eps)
    if op.gamma is not None:
        scale = scale * op.gamma
    y = (y - op.running_mean[None, :, None, None]) * scale[None, :, None, None]
    if op.beta is not None:
        y = y + op.beta[None, :, None, None]
    return y


if __name__ == "__main__":
    key = jax.random.PRNGKey(0)
    kx, kw, km, kv, kw1 = jax.random.split(key, 5)

    N, C_in, H, W = 2, 4, 16, 16
    C_out, ksize, stride = 8, 3, 1

    x = jax.random.normal(kx, (N, C_in, H, W), jnp.float32)

    # --- 3x3 case (padding=1), resident-weight path ---
    op = ReLUConvBNPallas(C_in, C_out, ksize, stride=stride, affine=False,
                          bias=False, track_running_stats=True)
    # Non-trivial running stats / weights to exercise the BN fold.
    op.weight = jax.random.normal(kw, (C_out, C_in, ksize, ksize), jnp.float32) * 0.1
    op.running_mean = jax.random.normal(km, (C_out,), jnp.float32) * 0.1
    op.running_var = jax.random.uniform(kv, (C_out,), jnp.float32,
                                        minval=0.5, maxval=1.5)

    y = jax.block_until_ready(op.forward(x))
    ref = _reference(x, op)
    assert y.shape == (N, C_out, H, W)
    err = float(jnp.max(jnp.abs(y - ref)))
    assert err < 5e-2, err   # bf16 MXU inputs (f32 accumulate) -> relaxed tol

    # --- Same case through the tiled fallback path ---
    op._force_tiled = True
    y_t = jax.block_until_ready(op.forward(x))
    err_t = float(jnp.max(jnp.abs(y_t - ref)))
    assert err_t < 5e-2, err_t
    op._force_tiled = False

    # --- 1x1 case (padding=0), K stays unpadded ---
    op1 = ReLUConvBNPallas(C_in, 16, 1, stride=1)
    op1.weight = jax.random.normal(kw1, (16, C_in, 1, 1), jnp.float32) * 0.1
    y1 = jax.block_until_ready(op1.forward(x))
    ref1 = _reference(x, op1)
    assert y1.shape == (N, 16, H, W)
    err1 = float(jnp.max(jnp.abs(y1 - ref1)))
    assert err1 < 5e-2, err1

    # --- AbstractPrimitive bookkeeping surface ---
    assert op.init_params["C_in"] == C_in and op.init_params["stride"] == stride
    assert "self" not in op.init_params and "kwargs" not in op.init_params
    assert op.get_embedded_ops() is None
    assert op.get_op_name == "ReLUConvBNPallas3x3"
    assert op1.get_op_name == "ReLUConvBNPallas1x1"

    print("KERNEL_OK")
</pallas_src>

<mosaic_0001>
module attributes {stable_mosaic.version = 11 : i64} {
  func.func @_resident_kernel(%arg0: i32, %arg1: memref<512x36xbf16, #tpu.memory_space<vmem>>, %arg2: memref<36x128xbf16, #tpu.memory_space<vmem>>, %arg3: memref<1x128xf32, #tpu.memory_space<vmem>>, %arg4: memref<512x128xf32, #tpu.memory_space<vmem>>) attributes {dimension_semantics = [#tpu.dimension_semantics<parallel>], iteration_bounds = array<i64: 1>, scalar_prefetch = 0 : i64, scratch_operands = 0 : i64, tpu.core_type = #tpu.core_type<tc>, window_params = [{transform_indices = @transform_0, window_bounds = array<i64: 512, 36>}, {pipeline_mode = #tpu.pipeline_mode<synchronous>, transform_indices = @transform_1, window_bounds = array<i64: 36, 128>}, {pipeline_mode = #tpu.pipeline_mode<synchronous>, transform_indices = @transform_2, window_bounds = array<i64: 1, 128>}, {transform_indices = @transform_3, window_bounds = array<i64: 512, 128>}]} {
    %c0 = arith.constant 0 : index
    %c0_0 = arith.constant 0 : index
    %0 = vector.load %arg1[%c0, %c0_0] : memref<512x36xbf16, #tpu.memory_space<vmem>>, vector<512x36xbf16>
    %cst = arith.constant 0.000000e+00 : bf16
    %1 = vector.broadcast %cst : bf16 to vector<512x36xbf16>
    %2 = arith.maximumf %0, %1 : vector<512x36xbf16>
    %c0_1 = arith.constant 0 : index
    %c0_2 = arith.constant 0 : index
    %3 = vector.load %arg2[%c0_1, %c0_2] : memref<36x128xbf16, #tpu.memory_space<vmem>>, vector<36x128xbf16>
    %cst_3 = arith.constant dense<0.000000e+00> : vector<512x128xf32>
    %4 = tpu.matmul %2, %3, %cst_3 {dimension_numbers = #tpu.dot_dimension_numbers<[1], [0], [0], [1], [0, 0, 1, 1], [], []>} : vector<512x36xbf16>, vector<36x128xbf16>, vector<512x128xf32> -> vector<512x128xf32>
    %c0_4 = arith.constant 0 : index
    %c0_5 = arith.constant 0 : index
    %5 = vector.load %arg3[%c0_4, %c0_5] : memref<1x128xf32, #tpu.memory_space<vmem>>, vector<1x128xf32>
    %6 = vector.broadcast %5 : vector<1x128xf32> to vector<512x128xf32>
    %7 = arith.addf %4, %6 : vector<512x128xf32>
    %c0_6 = arith.constant 0 : index
    %c0_7 = arith.constant 0 : index
    %8 = vector.load %arg4[%c0_6, %c0_7] : memref<512x128xf32, #tpu.memory_space<vmem>>, vector<512x128xf32>
    tpu.vector_store %arg4[%c0_6, %c0_7], %7 {strides = array<i32>} : memref<512x128xf32, #tpu.memory_space<vmem>>, vector<512x128xf32>,
    return
  }
  func.func @transform_0(%arg0: i32) -> (i32, i32) {
    %c0_i32 = arith.constant 0 : i32
    %c0_i32_0 = arith.constant 0 : i32
    return %arg0, %c0_i32 : i32, i32
  }
  func.func @transform_1(%arg0: i32) -> (i32, i32) {
    %c0_i32 = arith.constant 0 : i32
    %c0_i32_0 = arith.constant 0 : i32
    %c0_i32_1 = arith.constant 0 : i32
    return %c0_i32, %c0_i32_0 : i32, i32
  }
  func.func @transform_2(%arg0: i32) -> (i32, i32) {
    %c0_i32 = arith.constant 0 : i32
    %c0_i32_0 = arith.constant 0 : i32
    %c0_i32_1 = arith.constant 0 : i32
    return %c0_i32, %c0_i32_0 : i32, i32
  }
  func.func @transform_3(%arg0: i32) -> (i32, i32) {
    %c0_i32 = arith.constant 0 : i32
    %c0_i32_0 = arith.constant 0 : i32
    return %arg0, %c0_i32 : i32, i32
  }
}

</mosaic_0001>

<bundles_post_ra>
// kernel: _relu_conv_bn_fwd.1
= control target key start
LH: loop header
LB: loop body
LE: loop exit
PB: predicated region body
PF: predicated region fallthrough
CT: control target
= control target key end

     0   :  { %vm427_vm0 = vcmask 1041408   ;;  %v973_v6 = vmov 0   ;;  %vm330_vm1 = vcmask 293888   ;;  %s1555_s1 = inlined_call_operand.vmem [shape: bf16[36,128], index: 1, kind: input, shape index: {}]   ;;  %s1556_s0 = inlined_call_operand.vmem [shape: bf16[512,36], index: 0, kind: input, shape index: {}]   ;;  %s1557_s2 = inlined_call_operand.vmem [shape: f32[1,128], index: 2, kind: input, shape index: {}]   ;;  %s1558_s3 = inlined_call_operand.vmem [shape: f32[512,128], index: 3, kind: output, shape index: {}]  }
   0x1   :  { %v970_v0 = vld [vmem:[%s1555_s1] sm:$0xff]   ;;  %v971_v1 = vld [vmem:[%s1555_s1 + $0x8] sm:$0xff]   ;;  %v972_v2 = vld [vmem:[%s1555_s1 + $0x10] ss:$0 sps:$4 sm:$0x33]  }
   0x2   :  { %891 = vmatprep.subr.bf16.mxu0 %v970_v0  ;;  %961 = vmatprep.subr.bf16.mxu1 %v970_v0  ;;  %v15_v3 = vld [vmem:[%s1556_s0] sm:$0xf]  ;;  %v16_v4 = vld [vmem:[%s1556_s0 + $0x4] sm:$0xf]  ;;  %v17_v11 = vld [vmem:[%s1556_s0 + $0x8] sm:$0xf] }
   0x3   :  { %892 = vmatpush3.bf16.msra.mxu0 %v970_v0  ;;  %964 = vmatpush3.bf16.msra.mxu1 %v970_v0  ;;  %v47_v5 = vld [vmem:[%s1556_s0 + $0x80] sm:$0xf]  ;;  %v79_v7 = vmax.bf16 %v973_v6, %v15_v3  ;;  %v80_v8 = vmax.bf16 %v973_v6, %v16_v4  ;;  %v48_v9 = vld [vmem:[%s1556_s0 + $0x84] sm:$0xf]  ;;  %v18_v13 = vld [vmem:[%s1556_s0 + $0xc] sm:$0xf]  ;;  %v81_v14 = vmax.bf16 %v973_v6, %v17_v11 }
   0x4   :  { %893 = vmatprep.subr.bf16.mxu0 %v971_v1  ;;  %962 = vmatprep.subr.bf16.mxu1 %v971_v1  ;;  %v111_v10 = vmax.bf16 %v973_v6, %v47_v5  ;;  %v112_v12 = vmax.bf16 %v973_v6, %v48_v9  ;;  %v49_v15 = vld [vmem:[%s1556_s0 + $0x88] sm:$0xf]  ;;  %v50_v16 = vld [vmem:[%s1556_s0 + $0x8c] sm:$0xf]  ;;  %v82_v18 = vmax.bf16 %v973_v6, %v18_v13  ;;  %v19_v21 = vld [vmem:[%s1556_s0 + $0x10] sm:$0xf] }
   0x5   :  { %v789_v17 = vcombine.low %v79_v7, %v80_v8  ;;  %v113_v19 = vmax.bf16 %v973_v6, %v49_v15  ;;  %v114_v20 = vmax.bf16 %v973_v6, %v50_v16  ;;  %v20_v22 = vld [vmem:[%s1556_s0 + $0x14] sm:$0xf]  ;;  %v51_v23 = vld [vmem:[%s1556_s0 + $0x90] sm:$0xf]  ;;  %v83_v25 = vmax.bf16 %v973_v6, %v19_v21  ;;  %v21_v33 = vld [vmem:[%s1556_s0 + $0x18] sm:$0xf] }
   0x6   :  { %v805_v24 = vcombine.low %v111_v10, %v112_v12  ;;  %v84_v26 = vmax.bf16 %v973_v6, %v20_v22  ;;  %v52_v27 = vld [vmem:[%s1556_s0 + $0x94] sm:$0xf]  ;;  %v429_v28 = vsel %vm427_vm0, %v972_v2, 0  ;;  %v115_v29 = vmax.bf16 %v973_v6, %v51_v23  ;;  %v22_v34 = vld [vmem:[%s1556_s0 + $0x1c] sm:$0xf] }
   0x7   :  { %894 = vmatpush3.bf16.msra.mxu0 %v971_v1  ;;  %965 = vmatpush3.bf16.msra.mxu1 %v971_v1  ;;  %v116_v30 = vmax.bf16 %v973_v6, %v52_v27  ;;  %v790_v31 = vcombine.low %v81_v14, %v82_v18  ;;  %v806_v32 = vcombine.low %v113_v19, %v114_v20  ;;  %v53_v37 = vld [vmem:[%s1556_s0 + $0x98] sm:$0xf]  ;;  %v54_v38 = vld [vmem:[%s1556_s0 + $0x9c] sm:$0xf]  ;;  %v23_v39 = vld [vmem:[%s1556_s0 + $0x20] sm:$0xf] }
   0x8   :  { %967 = vmatprep.subr.msk.bf16.mxu0 %vm427_vm0, %v972_v2  ;;  %968 = vmatprep.subr.msk.bf16.mxu1 %vm427_vm0, %v972_v2  ;;  %v791_v35 = vcombine.low %v83_v25, %v84_v26  ;;  %v24_v40 = vld [vmem:[%s1556_s0 + $0x24] sm:$0xf]  ;;  %v55_v41 = vld [vmem:[%s1556_s0 + $0xa0] sm:$0xf]  ;;  %v85_v43 = vmax.bf16 %v973_v6, %v21_v33  ;;  %v86_v44 = vmax.bf16 %v973_v6, %v22_v34  ;;  %v25_v53 = vld [vmem:[%s1556_s0 + $0x28] sm:$0xf] }
   0x9   :  { %897 = vmatprep.mubr.msk.bf16.mxu0 %vm330_vm1, %v789_v17  ;;  %929 = vmatprep.mubr.msk.bf16.mxu1 %vm330_vm1, %v805_v24  ;;  %v807_v36 = vcombine.low %v115_v29, %v116_v30  ;;  %v56_v42 = vld [vmem:[%s1556_s0 + $0xa4] sm:$0xf]  ;;  %v117_v45 = vmax.bf16 %v973_v6, %v53_v37  ;;  %v118_v46 = vmax.bf16 %v973_v6, %v54_v38  ;;  %v26_v54 = vld [vmem:[%s1556_s0 + $0x2c] sm:$0xf]  ;;  %v57_v57 = vld [vmem:[%s1556_s0 + $0xa8] sm:$0xf] }
   0xa   :  { %v87_v47 = vmax.bf16 %v973_v6, %v23_v39  ;;  %v88_v48 = vmax.bf16 %v973_v6, %v24_v40  ;;  %v119_v49 = vmax.bf16 %v973_v6, %v55_v41  ;;  %v120_v50 = vmax.bf16 %v973_v6, %v56_v42  ;;  %v58_v58 = vld [vmem:[%s1556_s0 + $0xac] sm:$0xf]  ;;  %v27_v59 = vld [vmem:[%s1556_s0 + $0x30] sm:$0xf]  ;;  %v28_v60 = vld [vmem:[%s1556_s0 + $0x34] sm:$0xf] }
   0xb   :  { %896 = vmatpush3.bf16.msra.mxu0 %v429_v28  ;;  %966 = vmatpush3.bf16.msra.mxu1 %v429_v28  ;;  %v792_v51 = vcombine.low %v85_v43, %v86_v44  ;;  %v808_v52 = vcombine.low %v117_v45, %v118_v46  ;;  %v59_v61 = vld [vmem:[%s1556_s0 + $0xb0] sm:$0xf]  ;;  %v60_v62 = vld [vmem:[%s1556_s0 + $0xb4] sm:$0xf]  ;;  %v89_v63 = vmax.bf16 %v973_v6, %v25_v53  ;;  %v29_v10 = vld [vmem:[%s1556_s0 + $0x38] sm:$0xf] }
   0xc   :  { %v793_v55 = vcombine.low %v87_v47, %v88_v48  ;;  %v809_v56 = vcombine.low %v119_v49, %v120_v50  ;;  %v90_v0 = vmax.bf16 %v973_v6, %v26_v54  ;;  %v121_v1 = vmax.bf16 %v973_v6, %v57_v57  ;;  %v30_v11 = vld [vmem:[%s1556_s0 + $0x3c] sm:$0xf]  ;;  %v61_v14 = vld [vmem:[%s1556_s0 + $0xb8] sm:$0xf]  ;;  %v31_v16 = vld [vmem:[%s1556_s0 + $0x40] sm:$0xf] }
   0xd   :  { %v122_v2 = vmax.bf16 %v973_v6, %v58_v58  ;;  %v91_v3 = vmax.bf16 %v973_v6, %v27_v59  ;;  %v92_v4 = vmax.bf16 %v973_v6, %v28_v60  ;;  %v123_v5 = vmax.bf16 %v973_v6, %v59_v61  ;;  %v62_v15 = vld [vmem:[%s1556_s0 + $0xbc] sm:$0xf]  ;;  %v32_v17 = vld [vmem:[%s1556_s0 + $0x44] sm:$0xf]  ;;  %v63_v18 = vld [vmem:[%s1556_s0 + $0xc0] sm:$0xf] }
   0xe   :  { %898 = vmatmul.mubr.msk.bf16.vlgmr.msra.gmra.mrb[0].mxu0 %vm330_vm1, %v790_v31  ;;  %930 = vmatmul.mubr.msk.bf16.vlgmr.msra.gmra.mrb[0].mxu1 %vm330_vm1, %v806_v32  ;;  %v124_v7 = vmax.bf16 %v973_v6, %v60_v62  ;;  %v794_v8 = vcombine.low %v89_v63, %v90_v0  ;;  %v64_v19 = vld [vmem:[%s1556_s0 + $0xc4] sm:$0xf]  ;;  %v93_v20 = vmax.bf16 %v973_v6, %v29_v10  ;;  %v33_v30 = vld [vmem:[%s1556_s0 + $0x48] sm:$0xf]  ;;  %v34_v31 = vld [vmem:[%s1556_s0 + $0x4c] sm:$0xf] }
   0xf   :  { %901 = vmatprep.mubr.msk.bf16.mxu0 %vm330_vm1, %v791_v35  ;;  %933 = vmatprep.mubr.msk.bf16.mxu1 %vm330_vm1, %v807_v36  ;;  %v810_v9 = vcombine.low %v121_v1, %v122_v2  ;;  %v795_v12 = vcombine.low %v91_v3, %v92_v4  ;;  %v94_v21 = vmax.bf16 %v973_v6, %v30_v11  ;;  %v65_v34 = vld [vmem:[%s1556_s0 + $0xc8] sm:$0xf]  ;;  %v66_v35 = vld [vmem:[%s1556_s0 + $0xcc] sm:$0xf]  ;;  %v35_v36 = vld [vmem:[%s1556_s0 + $0x50] sm:$0xf] }
  0x10   :  { %v811_v13 = vcombine.low %v123_v5, %v124_v7  ;;  %v125_v22 = vmax.bf16 %v973_v6, %v61_v14  ;;  %v126_v23 = vmax.bf16 %v973_v6, %v62_v15  ;;  %v95_v24 = vmax.bf16 %v973_v6, %v31_v16  ;;  %v36_v37 = vld [vmem:[%s1556_s0 + $0x54] sm:$0xf]  ;;  %v67_v38 = vld [vmem:[%s1556_s0 + $0xd0] sm:$0xf]  ;;  %v37_v50 = vld [vmem:[%s1556_s0 + $0x58] sm:$0xf] }
  0x11   :  { %v96_v25 = vmax.bf16 %v973_v6, %v32_v17  ;;  %v127_v26 = vmax.bf16 %v973_v6, %v63_v18  ;;  %v128_v27 = vmax.bf16 %v973_v6, %v64_v19  ;;  %v796_v28 = vcombine.low %v93_v20, %v94_v21  ;;  %v68_v39 = vld [vmem:[%s1556_s0 + $0xd4] sm:$0xf]  ;;  %v69_v54 = vld [vmem:[%s1556_s0 + $0xd8] sm:$0xf]  ;;  %v40_v57 = vld [vmem:[%s1556_s0 + $0x64] sm:$0xf] }
  0x12   :  { %v812_v29 = vcombine.low %v125_v22, %v126_v23  ;;  %v97_v40 = vmax.bf16 %v973_v6, %v33_v30  ;;  %v98_v41 = vmax.bf16 %v973_v6, %v34_v31  ;;  %v129_v42 = vmax.bf16 %v973_v6, %v65_v34  ;;  %v71_v58 = vld [vmem:[%s1556_s0 + $0xe0] sm:$0xf]  ;;  %v72_v59 = vld [vmem:[%s1556_s0 + $0xe4] sm:$0xf]  ;;  %v41_v7 = vld [vmem:[%s1556_s0 + $0x68] sm:$0xf] }
  0x13   :  { %v797_v32 = vcombine.low %v95_v24, %v96_v25  ;;  %v813_v33 = vcombine.low %v127_v26, %v128_v27  ;;  %v130_v43 = vmax.bf16 %v973_v6, %v66_v35  ;;  %v99_v44 = vmax.bf16 %v973_v6, %v35_v36  ;;  %v73_v11 = vld [vmem:[%s1556_s0 + $0xe8] sm:$0xf]  ;;  %v44_v14 = vld [vmem:[%s1556_s0 + $0x74] sm:$0xf]  ;;  %v75_v15 = vld [vmem:[%s1556_s0 + $0xf0] sm:$0xf] }
  0x14   :  { %v100_v45 = vmax.bf16 %v973_v6, %v36_v37  ;;  %v131_v46 = vmax.bf16 %v973_v6, %v67_v38  ;;  %v132_v47 = vmax.bf16 %v973_v6, %v68_v39  ;;  %v798_v48 = vcombine.low %v97_v40, %v98_v41  ;;  %v76_v16 = vld [vmem:[%s1556_s0 + $0xf4] sm:$0xf]  ;;  %v45_v27 = vld [vmem:[%s1556_s0 + $0x78] sm:$0xf]  ;;  %v46_v30 = vld [vmem:[%s1556_s0 + $0x7c] sm:$0xf] }
  0x15   :  { %v814_v49 = vcombine.low %v129_v42, %v130_v43  ;;  %v101_v60 = vmax.bf16 %v973_v6, %v37_v50  ;;  %v133_v62 = vmax.bf16 %v973_v6, %v69_v54  ;;  %v104_v1 = vmax.bf16 %v973_v6, %v40_v57  ;;  %v77_v31 = vld [vmem:[%s1556_s0 + $0xf8] sm:$0xf]  ;;  %v1297_v39 = vld [vmem:[%s1557_s2] ss:$0 sm:$0xff] }
  0x16   :  { %902 = vmatmul.mubr.msk.bf16.gmra.mrb[4].mxu0 %vm330_vm1, %v792_v51  ;;  %934 = vmatmul.mubr.msk.bf16.gmra.mrb[4].mxu1 %vm330_vm1, %v808_v52  ;;  %v38_v51 = vld [vmem:[%s1556_s0 + $0x5c] sm:$0xf]  ;;  %v799_v52 = vcombine.low %v99_v44, %v100_v45  ;;  %v815_v53 = vcombine.low %v131_v46, %v132_v47  ;;  %v135_v2 = vmax.bf16 %v973_v6, %v71_v58 }
  0x17   :  { %905 = vmatprep.mubr.msk.bf16.mxu0 %vm330_vm1, %v793_v55  ;;  %937 = vmatprep.mubr.msk.bf16.mxu1 %vm330_vm1, %v809_v56  ;;  %v70_v55 = vld [vmem:[%s1556_s0 + $0xdc] sm:$0xf]  ;;  %v39_v56 = vld [vmem:[%s1556_s0 + $0x60] sm:$0xf]  ;;  %v102_v61 = vmax.bf16 %v973_v6, %v38_v51  ;;  %v136_v3 = vmax.bf16 %v973_v6, %v72_v59  ;;  %v105_v17 = vmax.bf16 %v973_v6, %v41_v7 }
  0x18   :  { %v134_v63 = vmax.bf16 %v973_v6, %v70_v55  ;;  %v103_v0 = vmax.bf16 %v973_v6, %v39_v56  ;;  %v137_v19 = vmax.bf16 %v973_v6, %v73_v11  ;;  %v108_v22 = vmax.bf16 %v973_v6, %v44_v14 }
  0x19   :  { %v800_v4 = vcombine.low %v101_v60, %v102_v61  ;;  %v817_v10 = vcombine.low %v135_v2, %v136_v3  ;;  %v139_v23 = vmax.bf16 %v973_v6, %v75_v15  ;;  %v140_v24 = vmax.bf16 %v973_v6, %v76_v16 }
  0x1a   :  { %v816_v5 = vcombine.low %v133_v62, %v134_v63  ;;  %v110_v34 = vmax.bf16 %v973_v6, %v46_v30  ;;  %v141_v35 = vmax.bf16 %v973_v6, %v77_v31 }
  0x1e   :  { %906 = vmatmul.mubr.msk.bf16.gmra.mrb[8].mxu0 %vm330_vm1, %v794_v8  ;;  %938 = vmatmul.mubr.msk.bf16.gmra.mrb[8].mxu1 %vm330_vm1, %v810_v9  ;;  %v42_v8 = vld [vmem:[%s1556_s0 + $0x6c] sm:$0xf]  ;;  %v801_v9 = vcombine.low %v103_v0, %v104_v1 }
  0x1f   :  { %909 = vmatprep.mubr.msk.bf16.mxu0 %vm330_vm1, %v795_v12  ;;  %941 = vmatprep.mubr.msk.bf16.mxu1 %vm330_vm1, %v811_v13  ;;  %v74_v12 = vld [vmem:[%s1556_s0 + $0xec] sm:$0xf]  ;;  %v43_v13 = vld [vmem:[%s1556_s0 + $0x70] sm:$0xf]  ;;  %v106_v18 = vmax.bf16 %v973_v6, %v42_v8 }
  0x20   :  { %v138_v20 = vmax.bf16 %v973_v6, %v74_v12  ;;  %v107_v21 = vmax.bf16 %v973_v6, %v43_v13 }
  0x21   :  { %v802_v25 = vcombine.low %v105_v17, %v106_v18 }
  0x22   :  { %v818_v26 = vcombine.low %v137_v19, %v138_v20 }
  0x26   :  { %910 = vmatmul.mubr.msk.bf16.gmra.mrb[12].mxu0 %vm330_vm1, %v796_v28  ;;  %942 = vmatmul.mubr.msk.bf16.gmra.mrb[12].mxu1 %vm330_vm1, %v812_v29  ;;  %v803_v28 = vcombine.low %v107_v21, %v108_v22  ;;  %v819_v29 = vcombine.low %v139_v23, %v140_v24 }
  0x27   :  { %913 = vmatprep.mubr.msk.bf16.mxu0 %vm330_vm1, %v797_v32  ;;  %945 = vmatprep.mubr.msk.bf16.mxu1 %vm330_vm1, %v813_v33  ;;  %v78_v32 = vld [vmem:[%s1556_s0 + $0xfc] sm:$0xf]  ;;  %v109_v33 = vmax.bf16 %v973_v6, %v45_v27 }
  0x28   :  { %v142_v36 = vmax.bf16 %v973_v6, %v78_v32 }
  0x29   :  { %v804_v37 = vcombine.low %v109_v33, %v110_v34 }
  0x2a   :  { %v820_v38 = vcombine.low %v141_v35, %v142_v36 }
  0x2e   :  { %914 = vmatmul.mubr.msk.bf16.gmra.mrb[16].mxu0 %vm330_vm1, %v798_v48  ;;  %946 = vmatmul.mubr.msk.bf16.gmra.mrb[16].mxu1 %vm330_vm1, %v814_v49 }
  0x2f   :  { %917 = vmatprep.mubr.msk.bf16.mxu0 %vm330_vm1, %v799_v52  ;;  %949 = vmatprep.mubr.msk.bf16.mxu1 %vm330_vm1, %v815_v53 }
  0x36   :  { %918 = vmatmul.mubr.msk.bf16.gmra.mrb[20].mxu0 %vm330_vm1, %v800_v4  ;;  %950 = vmatmul.mubr.msk.bf16.gmra.mrb[20].mxu1 %vm330_vm1, %v816_v5 }
  0x37   :  { %921 = vmatprep.mubr.msk.bf16.mxu0 %vm330_vm1, %v801_v9  ;;  %953 = vmatprep.mubr.msk.bf16.mxu1 %vm330_vm1, %v817_v10 }
  0x3e   :  { %922 = vmatmul.mubr.msk.bf16.gmra.mrb[24].mxu0 %vm330_vm1, %v802_v25  ;;  %954 = vmatmul.mubr.msk.bf16.gmra.mrb[24].mxu1 %vm330_vm1, %v818_v26 }
  0x3f   :  { %925 = vmatprep.mubr.msk.bf16.mxu0 %vm330_vm1, %v803_v28  ;;  %957 = vmatprep.mubr.msk.bf16.mxu1 %vm330_vm1, %v819_v29 }
  0x46   :  { %926 = vmatmul.mubr.msk.bf16.gmra.mrb[28].mxu0 %vm330_vm1, %v804_v37  ;;  %958 = vmatmul.mubr.msk.bf16.gmra.mrb[28].mxu1 %vm330_vm1, %v820_v38 }
  0xe1   :  { %v899_v40 = vpop.f32.mrb[0].mxu0  ;;  %v931_v41 = vpop.f32.mrb[0].mxu1 }
  0xe2   :  { %v474_v42 = vadd.f32 %v899_v40, %v1297_v39  ;;  %v602_v6 = vadd.f32 %v931_v41, %v1297_v39  ;;  %v465_v43 = vpop.f32.mrb[1].mxu0  ;;  %v593_v44 = vpop.f32.mrb[1].mxu1 }
  0xe3   :  { %v466_v45 = vadd.f32 %v1297_v39, %v465_v43  ;;  %v594_v46 = vadd.f32 %v1297_v39, %v593_v44  ;;  %v900_v47 = vpop.f32.mrb[2].mxu0  ;;  %v932_v48 = vpop.f32.mrb[2].mxu1 }
  0xe4   :  { %722 = vst [vmem:[%s1558_s3 + $0x10] sm:$0xff] %v474_v42  ;;  %754 = vst [vmem:[%s1558_s3 + $0x110] sm:$0xff] %v602_v6  ;;  %v477_v49 = vadd.f32 %v900_v47, %v1297_v39  ;;  %v605_v50 = vadd.f32 %v932_v48, %v1297_v39  ;;  %v468_v51 = vpop.f32.mrb[3].mxu0  ;;  %v596_v52 = vpop.f32.mrb[3].mxu1 }
  0xe5   :  { %720 = vst [vmem:[%s1558_s3] sm:$0xff] %v466_v45  ;;  %752 = vst [vmem:[%s1558_s3 + $0x100] sm:$0xff] %v594_v46  ;;  %v469_v53 = vadd.f32 %v1297_v39, %v468_v51  ;;  %v597_v54 = vadd.f32 %v1297_v39, %v596_v52 }
  0xe6   :  { %723 = vst [vmem:[%s1558_s3 + $0x18] sm:$0xff] %v477_v49  ;;  %755 = vst [vmem:[%s1558_s3 + $0x118] sm:$0xff] %v605_v50 }
  0xe7   :  { %721 = vst [vmem:[%s1558_s3 + $0x8] sm:$0xff] %v469_v53  ;;  %753 = vst [vmem:[%s1558_s3 + $0x108] sm:$0xff] %v597_v54 }
  0xe9   :  { %v903_v55 = vpop.f32.mrb[4].mxu0  ;;  %v935_v56 = vpop.f32.mrb[4].mxu1 }
  0xea   :  { %v490_v57 = vadd.f32 %v903_v55, %v1297_v39  ;;  %v618_v58 = vadd.f32 %v935_v56, %v1297_v39  ;;  %v481_v59 = vpop.f32.mrb[5].mxu0  ;;  %v609_v60 = vpop.f32.mrb[5].mxu1 }
  0xeb   :  { %v482_v61 = vadd.f32 %v1297_v39, %v481_v59  ;;  %v610_v62 = vadd.f32 %v1297_v39, %v609_v60  ;;  %v904_v63 = vpop.f32.mrb[6].mxu0  ;;  %v936_v0 = vpop.f32.mrb[6].mxu1 }
  0xec   :  { %726 = vst [vmem:[%s1558_s3 + $0x30] sm:$0xff] %v490_v57  ;;  %758 = vst [vmem:[%s1558_s3 + $0x130] sm:$0xff] %v618_v58  ;;  %v493_v1 = vadd.f32 %v904_v63, %v1297_v39  ;;  %v621_v2 = vadd.f32 %v936_v0, %v1297_v39  ;;  %v484_v3 = vpop.f32.mrb[7].mxu0  ;;  %v612_v4 = vpop.f32.mrb[7].mxu1 }
  0xed   :  { %724 = vst [vmem:[%s1558_s3 + $0x20] sm:$0xff] %v482_v61  ;;  %756 = vst [vmem:[%s1558_s3 + $0x120] sm:$0xff] %v610_v62  ;;  %v485_v5 = vadd.f32 %v1297_v39, %v484_v3  ;;  %v613_v7 = vadd.f32 %v1297_v39, %v612_v4 }
  0xee   :  { %727 = vst [vmem:[%s1558_s3 + $0x38] sm:$0xff] %v493_v1  ;;  %759 = vst [vmem:[%s1558_s3 + $0x138] sm:$0xff] %v621_v2 }
  0xef   :  { %725 = vst [vmem:[%s1558_s3 + $0x28] sm:$0xff] %v485_v5  ;;  %757 = vst [vmem:[%s1558_s3 + $0x128] sm:$0xff] %v613_v7 }
  0xf1   :  { %v907_v8 = vpop.f32.mrb[8].mxu0  ;;  %v939_v9 = vpop.f32.mrb[8].mxu1 }
  0xf2   :  { %v506_v10 = vadd.f32 %v907_v8, %v1297_v39  ;;  %v634_v11 = vadd.f32 %v939_v9, %v1297_v39  ;;  %v497_v12 = vpop.f32.mrb[9].mxu0  ;;  %v625_v13 = vpop.f32.mrb[9].mxu1 }
  0xf3   :  { %v498_v14 = vadd.f32 %v1297_v39, %v497_v12  ;;  %v626_v15 = vadd.f32 %v1297_v39, %v625_v13  ;;  %v908_v16 = vpop.f32.mrb[10].mxu0  ;;  %v940_v17 = vpop.f32.mrb[10].mxu1 }
  0xf4   :  { %730 = vst [vmem:[%s1558_s3 + $0x50] sm:$0xff] %v506_v10  ;;  %762 = vst [vmem:[%s1558_s3 + $0x150] sm:$0xff] %v634_v11  ;;  %v509_v18 = vadd.f32 %v908_v16, %v1297_v39  ;;  %v637_v19 = vadd.f32 %v940_v17, %v1297_v39  ;;  %v500_v20 = vpop.f32.mrb[11].mxu0  ;;  %v628_v21 = vpop.f32.mrb[11].mxu1 }
  0xf5   :  { %728 = vst [vmem:[%s1558_s3 + $0x40] sm:$0xff] %v498_v14  ;;  %760 = vst [vmem:[%s1558_s3 + $0x140] sm:$0xff] %v626_v15  ;;  %v501_v22 = vadd.f32 %v1297_v39, %v500_v20  ;;  %v629_v23 = vadd.f32 %v1297_v39, %v628_v21 }
  0xf6   :  { %731 = vst [vmem:[%s1558_s3 + $0x58] sm:$0xff] %v509_v18  ;;  %763 = vst [vmem:[%s1558_s3 + $0x158] sm:$0xff] %v637_v19 }
  0xf7   :  { %729 = vst [vmem:[%s1558_s3 + $0x48] sm:$0xff] %v501_v22  ;;  %761 = vst [vmem:[%s1558_s3 + $0x148] sm:$0xff] %v629_v23 }
  0xf9   :  { %v911_v24 = vpop.f32.mrb[12].mxu0  ;;  %v943_v25 = vpop.f32.mrb[12].mxu1 }
  0xfa   :  { %v522_v26 = vadd.f32 %v911_v24, %v1297_v39  ;;  %v650_v27 = vadd.f32 %v943_v25, %v1297_v39  ;;  %v513_v28 = vpop.f32.mrb[13].mxu0  ;;  %v641_v29 = vpop.f32.mrb[13].mxu1 }
  0xfb   :  { %v514_v30 = vadd.f32 %v1297_v39, %v513_v28  ;;  %v642_v31 = vadd.f32 %v1297_v39, %v641_v29  ;;  %v912_v32 = vpop.f32.mrb[14].mxu0  ;;  %v944_v33 = vpop.f32.mrb[14].mxu1 }
  0xfc   :  { %734 = vst [vmem:[%s1558_s3 + $0x70] sm:$0xff] %v522_v26  ;;  %766 = vst [vmem:[%s1558_s3 + $0x170] sm:$0xff] %v650_v27  ;;  %v525_v34 = vadd.f32 %v912_v32, %v1297_v39  ;;  %v653_v35 = vadd.f32 %v944_v33, %v1297_v39  ;;  %v516_v36 = vpop.f32.mrb[15].mxu0  ;;  %v644_v37 = vpop.f32.mrb[15].mxu1 }
  0xfd   :  { %732 = vst [vmem:[%s1558_s3 + $0x60] sm:$0xff] %v514_v30  ;;  %764 = vst [vmem:[%s1558_s3 + $0x160] sm:$0xff] %v642_v31  ;;  %v517_v38 = vadd.f32 %v1297_v39, %v516_v36  ;;  %v645_v40 = vadd.f32 %v1297_v39, %v644_v37 }
  0xfe   :  { %735 = vst [vmem:[%s1558_s3 + $0x78] sm:$0xff] %v525_v34  ;;  %767 = vst [vmem:[%s1558_s3 + $0x178] sm:$0xff] %v653_v35 }
  0xff   :  { %733 = vst [vmem:[%s1558_s3 + $0x68] sm:$0xff] %v517_v38  ;;  %765 = vst [vmem:[%s1558_s3 + $0x168] sm:$0xff] %v645_v40 }
 0x101   :  { %v915_v41 = vpop.f32.mrb[16].mxu0  ;;  %v947_v42 = vpop.f32.mrb[16].mxu1 }
 0x102   :  { %v538_v6 = vadd.f32 %v915_v41, %v1297_v39  ;;  %v666_v43 = vadd.f32 %v947_v42, %v1297_v39  ;;  %v529_v44 = vpop.f32.mrb[17].mxu0  ;;  %v657_v45 = vpop.f32.mrb[17].mxu1 }
 0x103   :  { %v530_v46 = vadd.f32 %v1297_v39, %v529_v44  ;;  %v658_v47 = vadd.f32 %v1297_v39, %v657_v45  ;;  %v916_v48 = vpop.f32.mrb[18].mxu0  ;;  %v948_v49 = vpop.f32.mrb[18].mxu1 }
 0x104   :  { %738 = vst [vmem:[%s1558_s3 + $0x90] sm:$0xff] %v538_v6  ;;  %770 = vst [vmem:[%s1558_s3 + $0x190] sm:$0xff] %v666_v43  ;;  %v541_v50 = vadd.f32 %v916_v48, %v1297_v39  ;;  %v669_v51 = vadd.f32 %v948_v49, %v1297_v39  ;;  %v532_v52 = vpop.f32.mrb[19].mxu0  ;;  %v660_v53 = vpop.f32.mrb[19].mxu1 }
 0x105   :  { %736 = vst [vmem:[%s1558_s3 + $0x80] sm:$0xff] %v530_v46  ;;  %768 = vst [vmem:[%s1558_s3 + $0x180] sm:$0xff] %v658_v47  ;;  %v533_v54 = vadd.f32 %v1297_v39, %v532_v52  ;;  %v661_v55 = vadd.f32 %v1297_v39, %v660_v53 }
 0x106   :  { %739 = vst [vmem:[%s1558_s3 + $0x98] sm:$0xff] %v541_v50  ;;  %771 = vst [vmem:[%s1558_s3 + $0x198] sm:$0xff] %v669_v51 }
 0x107   :  { %737 = vst [vmem:[%s1558_s3 + $0x88] sm:$0xff] %v533_v54  ;;  %769 = vst [vmem:[%s1558_s3 + $0x188] sm:$0xff] %v661_v55 }
 0x109   :  { %v919_v56 = vpop.f32.mrb[20].mxu0  ;;  %v951_v57 = vpop.f32.mrb[20].mxu1 }
 0x10a   :  { %v554_v58 = vadd.f32 %v919_v56, %v1297_v39  ;;  %v682_v59 = vadd.f32 %v951_v57, %v1297_v39  ;;  %v545_v60 = vpop.f32.mrb[21].mxu0  ;;  %v673_v61 = vpop.f32.mrb[21].mxu1 }
 0x10b   :  { %v546_v62 = vadd.f32 %v1297_v39, %v545_v60  ;;  %v674_v63 = vadd.f32 %v1297_v39, %v673_v61  ;;  %v920_v0 = vpop.f32.mrb[22].mxu0  ;;  %v952_v1 = vpop.f32.mrb[22].mxu1 }
 0x10c   :  { %742 = vst [vmem:[%s1558_s3 + $0xb0] sm:$0xff] %v554_v58  ;;  %774 = vst [vmem:[%s1558_s3 + $0x1b0] sm:$0xff] %v682_v59  ;;  %v557_v2 = vadd.f32 %v920_v0, %v1297_v39  ;;  %v685_v3 = vadd.f32 %v952_v1, %v1297_v39  ;;  %v548_v4 = vpop.f32.mrb[23].mxu0  ;;  %v676_v5 = vpop.f32.mrb[23].mxu1 }
 0x10d   :  { %740 = vst [vmem:[%s1558_s3 + $0xa0] sm:$0xff] %v546_v62  ;;  %772 = vst [vmem:[%s1558_s3 + $0x1a0] sm:$0xff] %v674_v63  ;;  %v549_v7 = vadd.f32 %v1297_v39, %v548_v4  ;;  %v677_v8 = vadd.f32 %v1297_v39, %v676_v5 }
 0x10e   :  { %743 = vst [vmem:[%s1558_s3 + $0xb8] sm:$0xff] %v557_v2  ;;  %775 = vst [vmem:[%s1558_s3 + $0x1b8] sm:$0xff] %v685_v3 }
 0x10f   :  { %741 = vst [vmem:[%s1558_s3 + $0xa8] sm:$0xff] %v549_v7  ;;  %773 = vst [vmem:[%s1558_s3 + $0x1a8] sm:$0xff] %v677_v8 }
 0x111   :  { %v923_v9 = vpop.f32.mrb[24].mxu0  ;;  %v955_v10 = vpop.f32.mrb[24].mxu1 }
 0x112   :  { %v570_v11 = vadd.f32 %v923_v9, %v1297_v39  ;;  %v698_v12 = vadd.f32 %v955_v10, %v1297_v39  ;;  %v561_v13 = vpop.f32.mrb[25].mxu0  ;;  %v689_v14 = vpop.f32.mrb[25].mxu1 }
 0x113   :  { %v562_v15 = vadd.f32 %v1297_v39, %v561_v13  ;;  %v690_v16 = vadd.f32 %v1297_v39, %v689_v14  ;;  %v924_v17 = vpop.f32.mrb[26].mxu0  ;;  %v956_v18 = vpop.f32.mrb[26].mxu1 }
 0x114   :  { %746 = vst [vmem:[%s1558_s3 + $0xd0] sm:$0xff] %v570_v11  ;;  %778 = vst [vmem:[%s1558_s3 + $0x1d0] sm:$0xff] %v698_v12  ;;  %v573_v19 = vadd.f32 %v924_v17, %v1297_v39  ;;  %v701_v20 = vadd.f32 %v956_v18, %v1297_v39  ;;  %v564_v21 = vpop.f32.mrb[27].mxu0  ;;  %v692_v22 = vpop.f32.mrb[27].mxu1 }
 0x115   :  { %744 = vst [vmem:[%s1558_s3 + $0xc0] sm:$0xff] %v562_v15  ;;  %776 = vst [vmem:[%s1558_s3 + $0x1c0] sm:$0xff] %v690_v16  ;;  %v565_v23 = vadd.f32 %v1297_v39, %v564_v21  ;;  %v693_v24 = vadd.f32 %v1297_v39, %v692_v22 }
 0x116   :  { %747 = vst [vmem:[%s1558_s3 + $0xd8] sm:$0xff] %v573_v19  ;;  %779 = vst [vmem:[%s1558_s3 + $0x1d8] sm:$0xff] %v701_v20 }
 0x117   :  { %745 = vst [vmem:[%s1558_s3 + $0xc8] sm:$0xff] %v565_v23  ;;  %777 = vst [vmem:[%s1558_s3 + $0x1c8] sm:$0xff] %v693_v24 }
 0x119   :  { %v927_v25 = vpop.f32.mrb[28].mxu0  ;;  %v959_v26 = vpop.f32.mrb[28].mxu1 }
 0x11a   :  { %v586_v27 = vadd.f32 %v927_v25, %v1297_v39  ;;  %v714_v28 = vadd.f32 %v959_v26, %v1297_v39  ;;  %v577_v29 = vpop.f32.mrb[29].mxu0  ;;  %v705_v30 = vpop.f32.mrb[29].mxu1 }
 0x11b   :  { %v578_v31 = vadd.f32 %v1297_v39, %v577_v29  ;;  %v706_v32 = vadd.f32 %v1297_v39, %v705_v30  ;;  %v928_v33 = vpop.f32.mrb[30].mxu0  ;;  %v960_v34 = vpop.f32.mrb[30].mxu1 }
 0x11c   :  { %750 = vst [vmem:[%s1558_s3 + $0xf0] sm:$0xff] %v586_v27  ;;  %782 = vst [vmem:[%s1558_s3 + $0x1f0] sm:$0xff] %v714_v28  ;;  %v589_v35 = vadd.f32 %v928_v33, %v1297_v39  ;;  %v717_v36 = vadd.f32 %v960_v34, %v1297_v39  ;;  %v580_v37 = vpop.f32.mrb[31].mxu0  ;;  %v708_v38 = vpop.f32.mrb[31].mxu1 }
 0x11d   :  { %748 = vst [vmem:[%s1558_s3 + $0xe0] sm:$0xff] %v578_v31  ;;  %780 = vst [vmem:[%s1558_s3 + $0x1e0] sm:$0xff] %v706_v32  ;;  %v581_v40 = vadd.f32 %v1297_v39, %v580_v37  ;;  %v709_v41 = vadd.f32 %v1297_v39, %v708_v38 }
 0x11e   :  { %751 = vst [vmem:[%s1558_s3 + $0xf8] sm:$0xff] %v589_v35  ;;  %783 = vst [vmem:[%s1558_s3 + $0x1f8] sm:$0xff] %v717_v36 }
 0x11f   :  { %749 = vst [vmem:[%s1558_s3 + $0xe8] sm:$0xff] %v581_v40  ;;  %781 = vst [vmem:[%s1558_s3 + $0x1e8] sm:$0xff] %v709_v41 }

</bundles_post_ra>
